<compile_context>
chip_gen: v5e
topology: v5e:2x2
jax: 0.10.0
libtpu: 0.0.40
codegen_flags: <defaults>
</compile_context>

<pallas_src>
import functools
import math

import jax
import jax.numpy as jnp
from jax import lax
from jax.experimental import pallas as pl
from jax.experimental.pallas import tpu as pltpu

# Explicit scoped-VMEM limit: above the 16/32 MiB defaults, below v7x's 64 MiB physical.
VMEM_LIMIT = 48 * 1024 * 1024


# ----------------------------------------------------------------------------- kernels

def matmul_bias_kernel(x_ref, w_ref, b_ref, o_ref, *, relu):
    # o = [relu](x @ w + b);  x: [TM, K] bf16, w: [K, N] bf16 (resident), b: [1, N] f32
    acc = jnp.dot(x_ref[...], w_ref[...], preferred_element_type=jnp.float32)
    acc = acc + b_ref[...]
    if relu:
        acc = jnp.maximum(acc, 0.0)
    o_ref[...] = acc.astype(o_ref.dtype)


def rpn_decode_kernel(x_ref, w_ref, b_ref, hw_ref, hb_ref, anch_ref,
                      logit_ref, boxes_ref, pad_ref,
                      *, Hf, Wf, A, img_h, img_w):
    # x_ref:   [Hf, Wf, Cf]  bf16 feature map for one image (un-padded: halo built in VMEM)
    # w_ref:   [9, Cf, Cf]   bf16 3x3 conv taps (resident)
    # hw_ref:  [5A, Cf] bf16 merged heads: rows [0:A]=objectness, [A:2A]=dx, [2A:3A]=dy,
    #                        [3A:4A]=dw, [4A:5A]=dh.  hb_ref: [5A, 1] f32 bias.
    # anch_ref:[4, A, M]  f32 anchors over the PADDED spatial grid (resident)
    # out:     logits [A, M] f32, boxes [4, A, M] f32, with M = Hf*(Wf+2); the 2 extra
    #          columns per row are garbage lanes kept only so every conv tap is a single
    #          contiguous row-band slice (the wrapper drops them).
    Cf = w_ref.shape[-1]
    Wp = Wf + 2
    M = Hf * Wp

    # ---- build the 1-px-halo padded activation in a flat 2-D VMEM scratch (no HBM pad pass)
    pad_ref[...] = jnp.zeros_like(pad_ref)
    for i in range(Hf):                         # static offsets (Hf is small here)
        r = (i + 1) * Wp + 1
        pad_ref[r:r + Wf, :] = x_ref[i]

    # ---- 3x3 s1 conv = 9 contiguous row-band dots (no per-tap reshape/relayout)
    acc = jnp.zeros((M, Cf), jnp.float32)
    for di in range(3):
        for dj in range(3):
            base = di * Wp + dj
            acc = acc + jnp.dot(pad_ref[base:base + M, :], w_ref[di * 3 + dj],
                                preferred_element_type=jnp.float32)
    t = jnp.maximum(acc + b_ref[...], 0.0).astype(jnp.bfloat16)        # [M, Cf]

    # ---- fused objectness + delta heads: ONE dot, lane-dense spatial axis
    dn = (((1,), (1,)), ((), ()))
    heads = lax.dot_general(hw_ref[...], t, dn,
                            preferred_element_type=jnp.float32) + hb_ref[...]   # [5A, M]
    logit_ref[...] = heads[0:A]

    # ---- Box2BoxTransform.apply_deltas (weights = 1) + clip, fused epilogue (exp -> EUP)
    dx, dy = heads[A:2 * A], heads[2 * A:3 * A]
    dw, dh = heads[3 * A:4 * A], heads[4 * A:5 * A]
    anch = anch_ref[...]
    ax1, ay1, ax2, ay2 = anch[0], anch[1], anch[2], anch[3]
    aw = ax2 - ax1
    ah = ay2 - ay1
    acx = ax1 + 0.5 * aw
    acy = ay1 + 0.5 * ah

    scale_clamp = math.log(1000.0 / 16.0)
    dw = jnp.minimum(dw, scale_clamp)
    dh = jnp.minimum(dh, scale_clamp)

    pcx = dx * aw + acx
    pcy = dy * ah + acy
    pw = jnp.exp(dw) * aw
    ph = jnp.exp(dh) * ah

    boxes_ref[0] = jnp.clip(pcx - 0.5 * pw, 0.0, img_w)
    boxes_ref[1] = jnp.clip(pcy - 0.5 * ph, 0.0, img_h)
    boxes_ref[2] = jnp.clip(pcx + 0.5 * pw, 0.0, img_w)
    boxes_ref[3] = jnp.clip(pcy + 0.5 * ph, 0.0, img_h)


# ----------------------------------------------------------------------------- wrappers

def pallas_matmul_bias(x, w, b, *, relu, out_dtype=jnp.float32, tm=4096):
    """M-tiled GEMM + bias (+ReLU). x must already be bf16 (no in-wrapper cast / HBM pass).
    The backbone GEMM (K=27, N=32) is HBM/overhead-bound, so TM is large (4096, or full M
    when smaller): even double-buffered that is ~1 MB of VMEM, and it amortizes the
    ~0.35 us per-grid-step pipeline overhead."""
    M, K = x.shape
    N = w.shape[1]
    wb = w.astype(jnp.bfloat16)
    bb = b.reshape(1, N).astype(jnp.float32)
    TM = M if M <= tm else tm                   # tm and M are multiples of 8 here
    grid_m = pl.cdiv(M, TM)
    kern = functools.partial(matmul_bias_kernel, relu=relu)
    return pl.pallas_call(
        kern,
        out_shape=jax.ShapeDtypeStruct((M, N), out_dtype),
        grid=(grid_m,),
        in_specs=[pl.BlockSpec((TM, K), lambda i: (i, 0)),
                  pl.BlockSpec((K, N), lambda i: (0, 0)),
                  pl.BlockSpec((1, N), lambda i: (0, 0))],
        out_specs=pl.BlockSpec((TM, N), lambda i: (i, 0)),
        compiler_params=pltpu.CompilerParams(
            dimension_semantics=("parallel",), vmem_limit_bytes=VMEM_LIMIT),
    )(x, wb, bb)


def pallas_rpn_head_decode(feat, params, anchors_pad, *, Hf, Wf, img_h, img_w):
    """Fused RPN: 3x3 conv + ReLU + merged 1x1 heads + apply_deltas + clip.
    One pallas_call, grid over batch; weights/anchors stay VMEM-resident across the grid."""
    B, _, _, Cf = feat.shape
    A = params["obj_b"].shape[0]
    Wp = Wf + 2
    Mpad = Hf * Wp

    rpn_w = params["rpn_w"].reshape(9, Cf, Cf).astype(jnp.bfloat16)
    rpn_b = params["rpn_b"].reshape(1, Cf).astype(jnp.float32)
    head_w = jnp.concatenate([params["obj_w_t"], params["del_w_t"]],
                             axis=0).astype(jnp.bfloat16)                    # [5A, Cf]
    head_b = jnp.concatenate([params["obj_b"], params["del_b"]],
                             axis=0).reshape(5 * A, 1).astype(jnp.float32)

    scratch_rows = (Hf + 2) * Wp + 8            # flat padded map + slack for garbage lanes

    kern = functools.partial(rpn_decode_kernel, Hf=Hf, Wf=Wf, A=A,
                             img_h=float(img_h), img_w=float(img_w))
    return pl.pallas_call(
        kern,
        out_shape=(jax.ShapeDtypeStruct((B, A, Mpad), jnp.float32),
                   jax.ShapeDtypeStruct((B, 4, A, Mpad), jnp.float32)),
        grid=(B,),
        in_specs=[
            pl.BlockSpec((None, Hf, Wf, Cf), lambda b: (b, 0, 0, 0)),    # per-image features
            pl.BlockSpec((9, Cf, Cf), lambda b: (0, 0, 0)),              # resident weights
            pl.BlockSpec((1, Cf), lambda b: (0, 0)),
            pl.BlockSpec((5 * A, Cf), lambda b: (0, 0)),
            pl.BlockSpec((5 * A, 1), lambda b: (0, 0)),
            pl.BlockSpec((4, A, Mpad), lambda b: (0, 0, 0)),             # resident anchors
        ],
        out_specs=[
            pl.BlockSpec((None, A, Mpad), lambda b: (b, 0, 0)),
            pl.BlockSpec((None, 4, A, Mpad), lambda b: (b, 0, 0, 0)),
        ],
        scratch_shapes=[pltpu.VMEM((scratch_rows, Cf), jnp.bfloat16)],
        compiler_params=pltpu.CompilerParams(
            dimension_semantics=("parallel",), vmem_limit_bytes=VMEM_LIMIT),
    )(feat, rpn_w, rpn_b, head_w, head_b, anchors_pad)


# ----------------------------------------------------------------------------- glue

def im2col(x_nhwc, ksize, stride, pad):
    """Patch extraction for the stride-2 backbone conv (glue). Input is already bf16 and
    already normalized, so the patches tensor is half the bytes of the previous f32 version
    and there is no extra cast pass. Returns [B, Ho, Wo, k*k*C] with (kh, kw, C) ordering."""
    B, H, W, C = x_nhwc.shape
    xp = jnp.pad(x_nhwc, ((0, 0), (pad, pad), (pad, pad), (0, 0)))
    Ho = (H + 2 * pad - ksize) // stride + 1
    Wo = (W + 2 * pad - ksize) // stride + 1
    patches = []
    for di in range(ksize):
        for dj in range(ksize):
            patches.append(xp[:, di:di + stride * Ho:stride, dj:dj + stride * Wo:stride, :])
    p = jnp.stack(patches, axis=3)                       # [B, Ho, Wo, k*k, C]
    return p.reshape(B, Ho, Wo, ksize * ksize * C), Ho, Wo


def make_anchors_padded(Hf, Wp, stride, sizes):
    """Anchors as [4, A, Hf*Wp] (x1,y1,x2,y2) over the PADDED spatial grid m = i*Wp + j.
    Columns j >= Wf are garbage lanes the kernel carries for contiguity (dropped later).
    Grid offset 0.0 matches detectron2 DefaultAnchorGenerator default."""
    ys = jnp.arange(Hf, dtype=jnp.float32) * stride
    xs = jnp.arange(Wp, dtype=jnp.float32) * stride
    cy, cx = jnp.meshgrid(ys, xs, indexing="ij")                   # [Hf, Wp]
    sizes = jnp.asarray(sizes, jnp.float32)
    half = sizes[:, None, None] / 2.0                              # [A,1,1]
    x1 = cx[None] - half
    y1 = cy[None] - half
    x2 = cx[None] + half
    y2 = cy[None] + half                                           # each [A, Hf, Wp]
    A = sizes.shape[0]
    return jnp.stack([x1, y1, x2, y2], axis=0).reshape(4, A, Hf * Wp)


def init_params(key, c_in=3, c_feat=32, num_anchors=3):
    ks = jax.random.split(key, 4)
    scale = 0.01
    return {
        # detectron2 default BGR pixel mean / std
        "pixel_mean": jnp.array([103.530, 116.280, 123.675], jnp.float32),
        "pixel_std": jnp.array([57.375, 57.120, 58.395], jnp.float32),
        # backbone conv3x3 s2 weight (kh, kw, Cin, Cout)
        "bb_w": scale * jax.random.normal(ks[0], (3, 3, c_in, c_feat), jnp.float32),
        "bb_b": jnp.zeros((c_feat,), jnp.float32),
        # RPN 3x3 conv (kh, kw, Cin, Cout)
        "rpn_w": scale * jax.random.normal(ks[1], (3, 3, c_feat, c_feat), jnp.float32),
        "rpn_b": jnp.zeros((c_feat,), jnp.float32),
        # RPN 1x1 heads stored transposed ([out, Cf]) for lane-dense head outputs.
        "obj_w_t": scale * jax.random.normal(ks[2], (num_anchors, c_feat), jnp.float32),
        "obj_b": jnp.zeros((num_anchors,), jnp.float32),
        # delta head rows ordered (coord, anchor): r = coord*A + a. NOTE: pretrained
        # detectron2 weights are anchor-major (a*4 + coord) and would need a row permute.
        "del_w_t": scale * jax.random.normal(ks[3], (4 * num_anchors, c_feat), jnp.float32),
        "del_b": jnp.zeros((4 * num_anchors,), jnp.float32),
    }


def proposal_network_forward(images_nchw, params, *, anchor_sizes=(4.0, 8.0, 16.0),
                             stride=2, topk=32):
    B, C, H, W = images_nchw.shape
    Cf = params["bb_b"].shape[0]
    A = params["obj_b"].shape[0]

    # --- (x - mean) / std fused with the bf16 cast: ONE elementwise HBM pass, exact at
    #     borders (zero-padding the normalized image == reference normalize-then-pad).
    # ImageList.from_tensors is identity here: all images share shape and satisfy divisibility.
    x = images_nchw.transpose(0, 2, 3, 1)                                 # NCHW -> NHWC
    x = ((x - params["pixel_mean"]) / params["pixel_std"]).astype(jnp.bfloat16)

    # --- backbone: conv3x3 s2 p1 + ReLU (bf16 im2col glue + large-TM bf16 GEMM)
    # TODO(synk): fully fuse the stride-2 conv (parity-split shifted dots) to drop the
    #             remaining im2col traffic entirely.
    patches, Hf, Wf = im2col(x, ksize=3, stride=stride, pad=1)
    w_bb = params["bb_w"].reshape(9 * C, Cf)                              # (kh,kw,cin) rows
    feat = pallas_matmul_bias(patches.reshape(B * Hf * Wf, 9 * C), w_bb,
                              params["bb_b"], relu=True, out_dtype=jnp.bfloat16)
    feat = feat.reshape(B, Hf, Wf, Cf)

    # --- fused RPN head + proposal decode (halo built in VMEM, deltas never hit HBM)
    Wp = Wf + 2
    anchors_pad = make_anchors_padded(Hf, Wp, stride, anchor_sizes)       # [4, A, Hf*Wp]
    logits_p, boxes_p = pallas_rpn_head_decode(feat, params, anchors_pad,
                                               Hf=Hf, Wf=Wf, img_h=H, img_w=W)

    # drop the 2 garbage lanes per row the kernel carries for contiguity, then flatten
    N = A * Hf * Wf
    logits = logits_p.reshape(B, A, Hf, Wp)[:, :, :, :Wf].reshape(B, N)
    boxes = boxes_p.reshape(B, 4, A, Hf, Wp)[..., :Wf].reshape(B, 4, N)

    # --- batched proposal selection + detector_postprocess (glue)
    # TODO(synk): detectron2 find_top_rpn_proposals applies NMS / per-level pre&post-NMS
    #             top-k; plain top-k (no NMS) has no clean Pallas equivalent, done in glue.
    top_scores, top_idx = lax.top_k(logits, topk)                         # [B, topk]
    top_boxes = jnp.take_along_axis(boxes, top_idx[:, None, :], axis=2)   # [B, 4, topk]
    top_boxes = jnp.transpose(top_boxes, (0, 2, 1))                       # [B, topk, 4]
    # detector_postprocess: requested output size == input size -> rescale is identity.

    return [{"proposals": {"proposal_boxes": top_boxes[b],
                           "objectness_logits": top_scores[b]}} for b in range(B)]


# ----------------------------------------------------------------------------- main

if __name__ == "__main__":
    key = jax.random.PRNGKey(0)
    k_img, k_par = jax.random.split(key)

    B, C, H, W = 2, 3, 16, 16
    images = jax.random.uniform(k_img, (B, C, H, W), jnp.float32, 0.0, 255.0)  # NCHW
    params = init_params(k_par, c_in=C, c_feat=32, num_anchors=3)

    out = proposal_network_forward(images, params)
    out = jax.block_until_ready(out)

    # sanity: correct shapes per image, finite values
    assert out[0]["proposals"]["proposal_boxes"].shape == (32, 4)
    assert out[0]["proposals"]["objectness_logits"].shape == (32,)
    assert bool(jnp.all(jnp.isfinite(out[0]["proposals"]["proposal_boxes"])))
    print("KERNEL_OK")
</pallas_src>

<mosaic_0001>
module attributes {stable_mosaic.version = 11 : i64} {
  func.func @matmul_bias_kernel(%arg0: i32, %arg1: memref<128x27xbf16, #tpu.memory_space<vmem>>, %arg2: memref<27x32xbf16, #tpu.memory_space<vmem>>, %arg3: memref<1x32xf32, #tpu.memory_space<vmem>>, %arg4: memref<128x32xbf16, #tpu.memory_space<vmem>>) attributes {dimension_semantics = [#tpu.dimension_semantics<parallel>], iteration_bounds = array<i64: 1>, scalar_prefetch = 0 : i64, scratch_operands = 0 : i64, tpu.core_type = #tpu.core_type<tc>, window_params = [{transform_indices = @transform_0, window_bounds = array<i64: 128, 27>}, {pipeline_mode = #tpu.pipeline_mode<synchronous>, transform_indices = @transform_1, window_bounds = array<i64: 27, 32>}, {pipeline_mode = #tpu.pipeline_mode<synchronous>, transform_indices = @transform_2, window_bounds = array<i64: 1, 32>}, {transform_indices = @transform_3, window_bounds = array<i64: 128, 32>}]} {
    %c0 = arith.constant 0 : index
    %c0_0 = arith.constant 0 : index
    %0 = vector.load %arg1[%c0, %c0_0] : memref<128x27xbf16, #tpu.memory_space<vmem>>, vector<128x27xbf16>
    %c0_1 = arith.constant 0 : index
    %c0_2 = arith.constant 0 : index
    %1 = vector.load %arg2[%c0_1, %c0_2] : memref<27x32xbf16, #tpu.memory_space<vmem>>, vector<27x32xbf16>
    %cst = arith.constant dense<0.000000e+00> : vector<128x32xf32>
    %2 = tpu.matmul %0, %1, %cst {dimension_numbers = #tpu.dot_dimension_numbers<[1], [0], [0], [1], [0, 0, 1, 1], [], []>} : vector<128x27xbf16>, vector<27x32xbf16>, vector<128x32xf32> -> vector<128x32xf32>
    %c0_3 = arith.constant 0 : index
    %c0_4 = arith.constant 0 : index
    %3 = vector.load %arg3[%c0_3, %c0_4] : memref<1x32xf32, #tpu.memory_space<vmem>>, vector<1x32xf32>
    %4 = vector.broadcast %3 : vector<1x32xf32> to vector<128x32xf32>
    %5 = arith.addf %2, %4 : vector<128x32xf32>
    %cst_5 = arith.constant 0.000000e+00 : f32
    %6 = vector.broadcast %cst_5 : f32 to vector<128x32xf32>
    %7 = arith.maximumf %5, %6 : vector<128x32xf32>
    %8 = arith.truncf %7 : vector<128x32xf32> to vector<128x32xbf16>
    %c0_6 = arith.constant 0 : index
    %c0_7 = arith.constant 0 : index
    %9 = vector.load %arg4[%c0_6, %c0_7] : memref<128x32xbf16, #tpu.memory_space<vmem>>, vector<128x32xbf16>
    tpu.vector_store %arg4[%c0_6, %c0_7], %8 {strides = array<i32>} : memref<128x32xbf16, #tpu.memory_space<vmem>>, vector<128x32xbf16>,
    return
  }
  func.func @transform_0(%arg0: i32) -> (i32, i32) {
    %c0_i32 = arith.constant 0 : i32
    %c0_i32_0 = arith.constant 0 : i32
    return %arg0, %c0_i32 : i32, i32
  }
  func.func @transform_1(%arg0: i32) -> (i32, i32) {
    %c0_i32 = arith.constant 0 : i32
    %c0_i32_0 = arith.constant 0 : i32
    %c0_i32_1 = arith.constant 0 : i32
    return %c0_i32, %c0_i32_0 : i32, i32
  }
  func.func @transform_2(%arg0: i32) -> (i32, i32) {
    %c0_i32 = arith.constant 0 : i32
    %c0_i32_0 = arith.constant 0 : i32
    %c0_i32_1 = arith.constant 0 : i32
    return %c0_i32, %c0_i32_0 : i32, i32
  }
  func.func @transform_3(%arg0: i32) -> (i32, i32) {
    %c0_i32 = arith.constant 0 : i32
    %c0_i32_0 = arith.constant 0 : i32
    return %arg0, %c0_i32 : i32, i32
  }
}

</mosaic_0001>

<bundles_post_ra>
// kernel: tpu_custom_call.1
= control target key start
LH: loop header
LB: loop body
LE: loop exit
PB: predicated region body
PF: predicated region fallthrough
CT: control target
= control target key end

     0   :  { %vm115_vm0 = vcmask 1044480   ;;  %vm116_vm1 = vcmask 1045504   ;;  %v290_v2 = vmov 65535   ;;  %vm90_vm2 = vcmask 220160   ;;  %s437_s1 = inlined_call_operand.vmem [shape: bf16[27,32], index: 1, kind: input, shape index: {}]   ;;  %s438_s2 = inlined_call_operand.vmem [shape: f32[1,32], index: 2, kind: input, shape index: {}]   ;;  %s439_s0 = inlined_call_operand.vmem [shape: bf16[128,27], index: 0, kind: input, shape index: {}]   ;;  %s440_s3 = inlined_call_operand.vmem [shape: bf16[128,32], index: 3, kind: output, shape index: {}]  }
   0x1   :  { %v262_v0 = vld [vmem:[%s437_s1 + $0x8] sm:$0xf]  ;;  %v281_v1 = vld [vmem:[%s437_s1 + $0x8] sm:$0x30]  ;;  %v117_v3 = vsel %vm115_vm0, 4294967295, %v290_v2  ;;  %v280_v7 = vld [vmem:[%s437_s1] sm:$0xff] }
   0x2   :  { %v263_v4 = vor.u32 %v281_v1, %v262_v0  ;;  %v118_v5 = vsel %vm116_vm1, %v117_v3, 0  ;;  %v272_v8 = vld [vmem:[%s439_s0] sm:$0xff]  ;;  %v274_v9 = vld [vmem:[%s439_s0 + $0x10] sm:$0xff]  ;;  %v273_v12 = vld [vmem:[%s439_s0 + $0x8] sm:$0xff]  ;;  %vm203_vm3 = vcmask 257024  }
   0x3   :  { %v276_v10 = vld [vmem:[%s439_s0 + $0x20] sm:$0xff]  ;;  %v278_v11 = vld [vmem:[%s439_s0 + $0x30] sm:$0xff]  ;;  %v275_v13 = vld [vmem:[%s439_s0 + $0x18] sm:$0xff] }
   0x4   :  { %v120_v6 = vand.u32 %v263_v4, %v118_v5  ;;  %v277_v14 = vld [vmem:[%s439_s0 + $0x28] sm:$0xff]  ;;  %v279_v15 = vld [vmem:[%s439_s0 + $0x38] sm:$0xff]  ;;  %v355_v16 = vld [vmem:[%s438_s2] ss:$0 sm:$0xff] }
   0x6   :  { %128 = vmatpush.bf16.msra.mxu0 %v120_v6  ;;  %282 = vmatpush.bf16.msra.mxu1 %v120_v6 }
   0x7   :  { %283 = vmatpush.bf16.msra.mxu2 %v120_v6  ;;  %284 = vmatpush.bf16.msra.mxu3 %v120_v6 }
   0xa   :  { %129 = vmatpush.bf16.msra.mxu0 %v280_v7  ;;  %285 = vmatpush.bf16.msra.mxu1 %v280_v7 }
   0xb   :  { %286 = vmatpush.bf16.msra.mxu2 %v280_v7  ;;  %287 = vmatpush.bf16.msra.mxu3 %v280_v7 }
   0xd   :  { %264 = vmatmul.msk.bf16.vlgmr.msra.gmra.mxu0 %vm90_vm2, %v272_v8  ;;  %266 = vmatmul.msk.bf16.vlgmr.msra.gmra.mxu1 %vm90_vm2, %v274_v9 }
   0xe   :  { %268 = vmatmul.msk.bf16.vlgmr.msra.gmra.mxu2 %vm90_vm2, %v276_v10  ;;  %270 = vmatmul.msk.bf16.vlgmr.msra.gmra.mxu3 %vm90_vm2, %v278_v11 }
  0x1d   :  { %265 = vmatmul.msk.bf16.gmra.mxu0 %vm90_vm2, %v273_v12  ;;  %267 = vmatmul.msk.bf16.gmra.mxu1 %vm90_vm2, %v275_v13 }
  0x1e   :  { %269 = vmatmul.msk.bf16.gmra.mxu2 %vm90_vm2, %v277_v14  ;;  %271 = vmatmul.msk.bf16.gmra.mxu3 %vm90_vm2, %v279_v15 }
  0x8a   :  { %v131_v17 = vpop.f32.mrf.mxu0  ;;  %v141_v18 = vpop.f32.mrf.mxu1 }
  0x8b   :  { %v132_v19 = vadd.f32 %v355_v16, %v131_v17  ;;  %v142_v20 = vadd.f32 %v355_v16, %v141_v18 }
  0x8d   :  { %v171_v21 = vmax.f32 %v132_v19, 0.0  ;;  %v175_v22 = vmax.f32 %v142_v20, 0.0 }
  0x8f   :  { %v187_v23 = vpack.c.bf16 %v171_v21, %v171_v21  ;;  %v191_v24 = vpack.c.bf16 %v175_v22, %v175_v22 }
  0x91   :  { %204 = vst.msk [vmem:[%s440_s3] sm:$0xf] %vm203_vm3, %v187_v23  ;;  %v151_v25 = vpop.f32.mrf.mxu2  ;;  %v161_v26 = vpop.f32.mrf.mxu3 }
  0x92   :  { %208 = vst.msk [vmem:[%s440_s3 + $0x10] sm:$0xf] %vm203_vm3, %v191_v24  ;;  %v152_v27 = vadd.f32 %v355_v16, %v151_v25  ;;  %v162_v28 = vadd.f32 %v355_v16, %v161_v26  ;;  %v133_v29 = vpop.f32.mrf.mxu0  ;;  %v143_v30 = vpop.f32.mrf.mxu1 }
  0x93   :  { %v134_v31 = vadd.f32 %v355_v16, %v133_v29  ;;  %v144_v32 = vadd.f32 %v355_v16, %v143_v30 }
  0x94   :  { %v179_v33 = vmax.f32 %v152_v27, 0.0  ;;  %v183_v34 = vmax.f32 %v162_v28, 0.0 }
  0x95   :  { %v172_v35 = vmax.f32 %v134_v31, 0.0  ;;  %v176_v36 = vmax.f32 %v144_v32, 0.0 }
  0x96   :  { %v195_v37 = vpack.c.bf16 %v179_v33, %v179_v33  ;;  %v199_v38 = vpack.c.bf16 %v183_v34, %v183_v34 }
  0x97   :  { %v188_v39 = vpack.c.bf16 %v172_v35, %v172_v35  ;;  %v192_v40 = vpack.c.bf16 %v176_v36, %v176_v36 }
  0x98   :  { %212 = vst.msk [vmem:[%s440_s3 + $0x20] sm:$0xf] %vm203_vm3, %v195_v37 }
  0x99   :  { %216 = vst.msk [vmem:[%s440_s3 + $0x30] sm:$0xf] %vm203_vm3, %v199_v38  ;;  %v153_v41 = vpop.f32.mrf.mxu2  ;;  %v163_v42 = vpop.f32.mrf.mxu3 }
  0x9a   :  { %205 = vst.msk [vmem:[%s440_s3 + $0x4] sm:$0xf] %vm203_vm3, %v188_v39  ;;  %v154_v43 = vadd.f32 %v355_v16, %v153_v41  ;;  %v164_v44 = vadd.f32 %v355_v16, %v163_v42  ;;  %v136_v45 = vpop.f32.mrf.mxu0  ;;  %v146_v46 = vpop.f32.mrf.mxu1 }
  0x9b   :  { %209 = vst.msk [vmem:[%s440_s3 + $0x14] sm:$0xf] %vm203_vm3, %v192_v40  ;;  %v137_v47 = vadd.f32 %v355_v16, %v136_v45  ;;  %v147_v48 = vadd.f32 %v355_v16, %v146_v46 }
  0x9c   :  { %v180_v49 = vmax.f32 %v154_v43, 0.0  ;;  %v184_v50 = vmax.f32 %v164_v44, 0.0 }
  0x9d   :  { %v173_v51 = vmax.f32 %v137_v47, 0.0  ;;  %v177_v52 = vmax.f32 %v147_v48, 0.0 }
  0x9e   :  { %v196_v53 = vpack.c.bf16 %v180_v49, %v180_v49  ;;  %v200_v54 = vpack.c.bf16 %v184_v50, %v184_v50 }
  0x9f   :  { %v189_v55 = vpack.c.bf16 %v173_v51, %v173_v51  ;;  %v193_v56 = vpack.c.bf16 %v177_v52, %v177_v52 }
  0xa0   :  { %213 = vst.msk [vmem:[%s440_s3 + $0x24] sm:$0xf] %vm203_vm3, %v196_v53 }
  0xa1   :  { %217 = vst.msk [vmem:[%s440_s3 + $0x34] sm:$0xf] %vm203_vm3, %v200_v54  ;;  %v156_v57 = vpop.f32.mrf.mxu2  ;;  %v166_v58 = vpop.f32.mrf.mxu3 }
  0xa2   :  { %206 = vst.msk [vmem:[%s440_s3 + $0x8] sm:$0xf] %vm203_vm3, %v189_v55  ;;  %v157_v59 = vadd.f32 %v355_v16, %v156_v57  ;;  %v167_v60 = vadd.f32 %v355_v16, %v166_v58  ;;  %v138_v61 = vpop.f32.mrf.mxu0  ;;  %v148_v62 = vpop.f32.mrf.mxu1 }
  0xa3   :  { %210 = vst.msk [vmem:[%s440_s3 + $0x18] sm:$0xf] %vm203_vm3, %v193_v56  ;;  %v139_v63 = vadd.f32 %v355_v16, %v138_v61  ;;  %v149_v0 = vadd.f32 %v355_v16, %v148_v62 }
  0xa4   :  { %v181_v1 = vmax.f32 %v157_v59, 0.0  ;;  %v185_v2 = vmax.f32 %v167_v60, 0.0 }
  0xa5   :  { %v174_v3 = vmax.f32 %v139_v63, 0.0  ;;  %v178_v4 = vmax.f32 %v149_v0, 0.0 }
  0xa6   :  { %v197_v5 = vpack.c.bf16 %v181_v1, %v181_v1  ;;  %v201_v6 = vpack.c.bf16 %v185_v2, %v185_v2 }
  0xa7   :  { %v190_v7 = vpack.c.bf16 %v174_v3, %v174_v3  ;;  %v194_v8 = vpack.c.bf16 %v178_v4, %v178_v4 }
  0xa8   :  { %214 = vst.msk [vmem:[%s440_s3 + $0x28] sm:$0xf] %vm203_vm3, %v197_v5 }
  0xa9   :  { %218 = vst.msk [vmem:[%s440_s3 + $0x38] sm:$0xf] %vm203_vm3, %v201_v6  ;;  %v158_v9 = vpop.f32.mrf.mxu2  ;;  %v168_v10 = vpop.f32.mrf.mxu3 }
  0xaa   :  { %207 = vst.msk [vmem:[%s440_s3 + $0xc] sm:$0xf] %vm203_vm3, %v190_v7  ;;  %v159_v11 = vadd.f32 %v355_v16, %v158_v9  ;;  %v169_v12 = vadd.f32 %v355_v16, %v168_v10 }
  0xab   :  { %211 = vst.msk [vmem:[%s440_s3 + $0x1c] sm:$0xf] %vm203_vm3, %v194_v8 }
  0xac   :  { %v182_v13 = vmax.f32 %v159_v11, 0.0  ;;  %v186_v14 = vmax.f32 %v169_v12, 0.0 }
  0xae   :  { %v198_v15 = vpack.c.bf16 %v182_v13, %v182_v13  ;;  %v202_v17 = vpack.c.bf16 %v186_v14, %v186_v14 }
  0xb0   :  { %215 = vst.msk [vmem:[%s440_s3 + $0x2c] sm:$0xf] %vm203_vm3, %v198_v15 }
  0xb1   :  { %219 = vst.msk [vmem:[%s440_s3 + $0x3c] sm:$0xf] %vm203_vm3, %v202_v17 }

</bundles_post_ra>
